<compile_context>
chip_gen: v6e
topology: v6e:2x2x1
jax: 0.10.0
libtpu: 0.0.40
codegen_flags: <defaults>
</compile_context>

<pallas_src>
import jax
import jax.numpy as jnp
from jax import lax
from jax.experimental import pallas as pl
from jax.experimental.pallas import tpu as pltpu


# ----------------------------------------------------------------------------
# Pallas kernel: 1x1 conv projection on NCHW, one (batch, spatial-tile) block
# ----------------------------------------------------------------------------
def _proj_kernel(x_ref, w_ref, b_ref, o_ref):
    # x_ref: (C_in,  tn)   activation tile (one image, tn pixels), compute dtype
    # w_ref: (C_out, C_in) 1x1-conv weight, compute dtype
    # b_ref: (C_out, 1)    f32 bias
    # o_ref: (C_out, tn)   output tile
    acc = jnp.dot(w_ref[...], x_ref[...], preferred_element_type=jnp.float32)
    o_ref[...] = (acc + b_ref[...]).astype(o_ref.dtype)


def conv1x1_proj_pallas(feat_nchw, weight, bias, *, tn_max=512,
                        compute_dtype=jnp.bfloat16):
    """1x1 Conv2d projection (PyTorch semantics) via Pallas, NCHW in / NCHW out.

    feat_nchw: (B, C_in, H, W)
    weight:    (C_out, C_in)    (PyTorch Conv2d 1x1 weight squeezed)
    bias:      (C_out,)
    returns:   (B, C_out, H, W) in feat_nchw.dtype
    """
    B, C_in, H, W = feat_nchw.shape
    C_out = weight.shape[0]
    HW = H * W
    out_dtype = feat_nchw.dtype

    # Flatten spatial dims (contiguous -> free) and pad up to a multiple of 128
    # so the spatial (lane) tile is lane-dense on all chip generations.
    x = feat_nchw.reshape(B, C_in, HW)
    M_pad = ((HW + 127) // 128) * 128
    if M_pad != HW:
        x = jnp.pad(x, ((0, 0), (0, 0), (0, M_pad - HW)))

    # Largest tile <= tn_max (multiple of 128) that divides the padded extent.
    tn = 128
    for cand in (1024, 512, 256, 128):
        if cand <= tn_max and M_pad % cand == 0:
            tn = cand
            break

    # bf16 inputs, f32 accumulation in-kernel; bias kept in f32.
    x_c = x.astype(compute_dtype)
    w_c = weight.astype(compute_dtype)                # (C_out, C_in)
    b_c = bias.astype(jnp.float32).reshape(C_out, 1)  # (C_out, 1)

    grid = (B, M_pad // tn)

    cost = pl.CostEstimate(
        flops=2 * B * M_pad * C_in * C_out,
        transcendentals=0,
        bytes_accessed=(x_c.size * x_c.dtype.itemsize
                        + w_c.size * w_c.dtype.itemsize
                        + b_c.size * b_c.dtype.itemsize
                        + B * C_out * M_pad * jnp.dtype(out_dtype).itemsize),
    )

    out_flat = pl.pallas_call(
        _proj_kernel,
        out_shape=jax.ShapeDtypeStruct((B, C_out, M_pad), out_dtype),
        grid_spec=pltpu.PrefetchScalarGridSpec(
            num_scalar_prefetch=0,
            grid=grid,
            in_specs=[
                # batch dim squeezed out of the kernel view -> (C_in, tn)
                pl.BlockSpec((None, C_in, tn), lambda b, j: (b, 0, j)),
                # weight / bias are grid-invariant (index_map constant)
                pl.BlockSpec((C_out, C_in), lambda b, j: (0, 0)),
                pl.BlockSpec((C_out, 1), lambda b, j: (0, 0)),
            ],
            out_specs=pl.BlockSpec((None, C_out, tn), lambda b, j: (b, 0, j)),
        ),
        compiler_params=pltpu.CompilerParams(
            dimension_semantics=("parallel", "parallel"),
            vmem_limit_bytes=32 * 1024 * 1024,
        ),
        cost_estimate=cost,
    )(x_c, w_c, b_c)

    if M_pad != HW:
        out_flat = out_flat[:, :, :HW]
    return out_flat.reshape(B, C_out, H, W)


# ----------------------------------------------------------------------------
# Synthetic deterministic backbone (plain-JAX glue, stands in for nn.Module)
# ----------------------------------------------------------------------------
def synthetic_backbone(x_nchw, conv_w, conv_b):
    """3x3 stride-2 conv (SAME) + ReLU, NCHW.  Returns a list like timm backbones."""
    y = lax.conv_general_dilated(
        x_nchw, conv_w,
        window_strides=(2, 2),
        padding="SAME",
        dimension_numbers=("NCHW", "OIHW", "NCHW"),
    )
    y = y + conv_b.reshape(1, -1, 1, 1)
    return [jnp.maximum(y, 0.0)]


# ----------------------------------------------------------------------------
# HybridEmbed forward
# ----------------------------------------------------------------------------
def hybrid_embed_forward(x_nchw, params):
    feat = synthetic_backbone(x_nchw, params["backbone_w"], params["backbone_b"])[-1]
    return conv1x1_proj_pallas(feat, params["proj_w"], params["proj_b"])


if __name__ == "__main__":
    # Small shapes consistent with the module:
    #   batch=2, in_chans=4, img_size=16  -> backbone stride 2 -> feature 8x8
    #   feature_dim=32, embed_dim=64
    B, C_in, IMG = 2, 4, 16
    FEAT_DIM, EMBED_DIM = 32, 64

    key = jax.random.PRNGKey(0)
    k_x, k_bw, k_bb, k_pw, k_pb = jax.random.split(key, 5)

    x = jax.random.normal(k_x, (B, C_in, IMG, IMG), dtype=jnp.float32)

    params = {
        # backbone: Conv2d(in_chans, feature_dim, 3, stride=2, padding=1)-like
        "backbone_w": 0.1 * jax.random.normal(k_bw, (FEAT_DIM, C_in, 3, 3), jnp.float32),
        "backbone_b": 0.1 * jax.random.normal(k_bb, (FEAT_DIM,), jnp.float32),
        # proj: Conv2d(feature_dim, embed_dim, kernel_size=1)
        "proj_w": 0.1 * jax.random.normal(k_pw, (EMBED_DIM, FEAT_DIM), jnp.float32),
        "proj_b": 0.1 * jax.random.normal(k_pb, (EMBED_DIM,), jnp.float32),
    }

    out = jax.block_until_ready(hybrid_embed_forward(x, params))
    assert out.shape == (B, EMBED_DIM, IMG // 2, IMG // 2), out.shape

    # Cross-check the Pallas 1x1-conv projection against a plain-JAX f32 reference.
    # (bf16 inputs with f32 accumulation -> loosened tolerance.)
    feat = synthetic_backbone(x, params["backbone_w"], params["backbone_b"])[-1]
    ref = jnp.einsum("bchw,oc->bohw", feat, params["proj_w"]) + \
        params["proj_b"].reshape(1, -1, 1, 1)
    assert jnp.allclose(out, ref, atol=3e-2, rtol=3e-2), \
        float(jnp.max(jnp.abs(out - ref)))

    print("KERNEL_OK")
</pallas_src>

<mosaic_0001>
module attributes {stable_mosaic.version = 11 : i64} {
  func.func @_proj_kernel(%arg0: i32, %arg1: i32, %arg2: memref<1x32x128xbf16, #tpu.memory_space<vmem>>, %arg3: memref<64x32xbf16, #tpu.memory_space<vmem>>, %arg4: memref<64x1xf32, #tpu.memory_space<vmem>>, %arg5: memref<1x64x128xf32, #tpu.memory_space<vmem>>) attributes {dimension_semantics = [#tpu.dimension_semantics<parallel>, #tpu.dimension_semantics<parallel>], iteration_bounds = array<i64: 2, 1>, scalar_prefetch = 0 : i64, scratch_operands = 0 : i64, tpu.core_type = #tpu.core_type<tc>, window_params = [{transform_indices = @transform_0, window_bounds = array<i64: 1, 32, 128>}, {pipeline_mode = #tpu.pipeline_mode<synchronous>, transform_indices = @transform_1, window_bounds = array<i64: 64, 32>}, {pipeline_mode = #tpu.pipeline_mode<synchronous>, transform_indices = @transform_2, window_bounds = array<i64: 64, 1>}, {transform_indices = @transform_3, window_bounds = array<i64: 1, 64, 128>}]} {
    %c0 = arith.constant 0 : index
    %c0_0 = arith.constant 0 : index
    %0 = vector.load %arg3[%c0, %c0_0] : memref<64x32xbf16, #tpu.memory_space<vmem>>, vector<64x32xbf16>
    %c0_1 = arith.constant 0 : index
    %c0_2 = arith.constant 0 : index
    %c0_3 = arith.constant 0 : index
    %1 = vector.load %arg2[%c0_1, %c0_2, %c0_3] : memref<1x32x128xbf16, #tpu.memory_space<vmem>>, vector<1x32x128xbf16>
    %2 = vector.shape_cast %1 : vector<1x32x128xbf16> to vector<32x128xbf16>
    %cst = arith.constant dense<0.000000e+00> : vector<64x128xf32>
    %3 = tpu.matmul %0, %2, %cst {dimension_numbers = #tpu.dot_dimension_numbers<[1], [0], [0], [1], [0, 0, 1, 1], [], []>} : vector<64x32xbf16>, vector<32x128xbf16>, vector<64x128xf32> -> vector<64x128xf32>
    %c0_4 = arith.constant 0 : index
    %c0_5 = arith.constant 0 : index
    %4 = vector.load %arg4[%c0_4, %c0_5] : memref<64x1xf32, #tpu.memory_space<vmem>>, vector<64x1xf32>
    %5 = vector.broadcast %4 : vector<64x1xf32> to vector<64x128xf32>
    %6 = arith.addf %3, %5 : vector<64x128xf32>
    %c0_6 = arith.constant 0 : index
    %c0_7 = arith.constant 0 : index
    %c0_8 = arith.constant 0 : index
    %7 = vector.load %arg5[%c0_6, %c0_7, %c0_8] : memref<1x64x128xf32, #tpu.memory_space<vmem>>, vector<1x64x128xf32>
    %8 = vector.shape_cast %7 : vector<1x64x128xf32> to vector<64x128xf32>
    %9 = vector.shape_cast %6 : vector<64x128xf32> to vector<1x64x128xf32>
    tpu.vector_store %arg5[%c0_6, %c0_7, %c0_8], %9 {strides = array<i32>} : memref<1x64x128xf32, #tpu.memory_space<vmem>>, vector<1x64x128xf32>,
    return
  }
  func.func @transform_0(%arg0: i32, %arg1: i32) -> (i32, i32, i32) {
    %c0_i32 = arith.constant 0 : i32
    %c0_i32_0 = arith.constant 0 : i32
    return %arg0, %c0_i32, %arg1 : i32, i32, i32
  }
  func.func @transform_1(%arg0: i32, %arg1: i32) -> (i32, i32) {
    %c0_i32 = arith.constant 0 : i32
    %c0_i32_0 = arith.constant 0 : i32
    %c0_i32_1 = arith.constant 0 : i32
    return %c0_i32, %c0_i32_0 : i32, i32
  }
  func.func @transform_2(%arg0: i32, %arg1: i32) -> (i32, i32) {
    %c0_i32 = arith.constant 0 : i32
    %c0_i32_0 = arith.constant 0 : i32
    %c0_i32_1 = arith.constant 0 : i32
    return %c0_i32, %c0_i32_0 : i32, i32
  }
  func.func @transform_3(%arg0: i32, %arg1: i32) -> (i32, i32, i32) {
    %c0_i32 = arith.constant 0 : i32
    %c0_i32_0 = arith.constant 0 : i32
    return %arg0, %c0_i32, %arg1 : i32, i32, i32
  }
}

</mosaic_0001>

<bundles_post_ra>
// kernel: tpu_custom_call.1
= control target key start
LH: loop header
LB: loop body
LE: loop exit
PB: predicated region body
PF: predicated region fallthrough
CT: control target
= control target key end

     0   :  { %8 = vsyncpa [#allocation3], 0  ;;  %s839_s0 = inlined_call_operand.vmem [shape: bf16[2,32,128], index: 0, kind: input, shape index: {}]   ;;  %s840_s1 = inlined_call_operand.vmem [shape: bf16[64,32], index: 1, kind: input, shape index: {}]   ;;  %s841_s2 = inlined_call_operand.vmem [shape: f32[64,1], index: 2, kind: input, shape index: {}]   ;;  %s842_s3 = inlined_call_operand.hbm [shape: f32[2,64,128], index: 3, kind: output, shape index: {}]  }
   0x1   :  { %10 = vsyncpa [#allocation3 + $0x1], 0  ;;  %s681_s12 = smov 0   ;;  %s683_s13 = smov 0  }
   0x2   :  { %s685_s14 = smov 0   ;;  %s687_s15 = smov 0  }
   0x3   :  { %s689_s16 = smov 0   ;;  %s691_s17 = smov 0  }
   0x4 LB: > { %s466_s18 = sadd.s32 4294967295, %s655_s17   ;;  %s467_s19 = sadd.s32 4294967294, %s655_s17   ;;  %s655_s17 = sphi %s691_s17, %s16_s17   ;;  %s651_s16 = sphi %s689_s16, %s849_s16   ;;  %s647_s15 = sphi %s687_s15, %s848_s15   ;;  %s643_s14 = sphi %s685_s14, %s847_s14   ;;  %s639_s13 = sphi %s683_s13, %s846_s13   ;;  %s635_s12 = sphi %s681_s12, %s845_s12  }
   0x5   : > { %s28_s20 = sadd.s32 1, %s651_s16  ;;  %s107_s21 = sadd.s32 1, %s643_s14 }
   0x6   : > { %p30_p0 = scmp.ge.s32.totalorder %s28_s20, 2  ;;  %p117_p1 = scmp.ne.s32.totalorder %s643_s14, %s639_s13 }
   0x7   : > { %p118_p2 = scmp.eq.s32.totalorder %s466_s18, 1  ;;  %p123_p3 = scmp.ne.s32.totalorder %s639_s13, %s635_s12 }
   0x8   : > { %s851_s20 = smov (%p30_p0, %s28_s20), 0  ;;  %p124_p5 = scmp.eq.s32.totalorder %s467_s19, 1 }
   0x9   : > { %p721_p4 = por %p118_p2, %p117_p1  ;;  %s102_s23 = ssub.s32 %s651_s16, %s851_s20 }
   0xa   : > { %p470_p6 = scmp.ge.s32.totalorder %s655_s17, 1  ;;  %p105_p7 = scmp.eq.s32.totalorder %s102_s23, 0 }
   0xb   : > { %p728_p8 = por %p124_p5, %p123_p3  ;;  %p159_p9 = scmp.lt.s32.totalorder %s655_s17, 3 }
   0xc   : > { %s734_s25 = scalar_select %p105_p7, %s643_s14, %s107_s21  }
   0xd   : > { %p160_p10 = pnand %p470_p6, %p159_p9 }
   0xe   : > { %p186_p11 = scmp.lt.s32.totalorder (!%p160_p10), %s647_s15, 1  ;;  %s490_s21 = sshll.u32 (!%p160_p10), %s647_s15, 10 }
   0xf   : > { %163 = sbr.rel (%p160_p10) target bundleno = 248 (0xf8), region = 32  ;;  %s788_s28 = scalar_lea.hbm (!%p160_p10), %s842_s3, %s490_s21 }
  0x14   : > { %v575_v0 = vld [vmem:[%s840_s1] sm:$0xff]   ;;  %vm287_vm0 = vcmask 261120   ;;  %v576_v1 = vld [vmem:[%s840_s1 + $0x10] sm:$0xff]   ;;  %s187_s30 = scalar_select %p186_p11, %s647_s15, 1  ;;  %v657_v2 = vmov 0   ;;  %v210_v7 = vld [vmem:[%s841_s2 + $0x18] sm:$0xff] }
  0x15   : > { %501 = vmatprep.mubr.msk.bf16.mxu0 %vm287_vm0, %v575_v0  ;;  %505 = vmatprep.mubr.msk.bf16.mxu1 %vm287_vm0, %v576_v1  ;;  %v209_v3 = vld [vmem:[%s841_s2 + $0x10] sm:$0xff]  ;;  %v207_v4 = vld [vmem:[%s841_s2] sm:$0xff]  ;;  %v208_v8 = vld [vmem:[%s841_s2 + $0x8] sm:$0xff] }
  0x16   : > { %s489_s4 = sshll.u32 %s187_s30, 4  ;;  %572 = vset.pattern.permute.xlu1 %v657_v2  ;;  %571 = vset.pattern.permute.xlu0 %v657_v2  ;;  %v577_v9 = vld [vmem:[%s840_s1 + $0x8] sm:$0xff]   ;;  %v578_v10 = vld [vmem:[%s840_s1 + $0x18] sm:$0xff]   ;;  %v211_v12 = vld [vmem:[%s841_s2 + $0x20] sm:$0xff]  ;;  %s658_s30 = smov [#allocation2]  }
  0x17   : > { %s193_s11 = scalar_lea.vmem %s839_s0, %s489_s4  ;;  %227 = vperm.xlu1 %572, %v209_v3   ;;  %217 = vperm.xlu0 %571, %v207_v4   ;;  %v212_v11 = vld [vmem:[%s841_s2 + $0x28] sm:$0xff]  ;;  %v214_v13 = vld [vmem:[%s841_s2 + $0x38] sm:$0xff]  ;;  %v213_v14 = vld [vmem:[%s841_s2 + $0x30] sm:$0xff]  ;;  %s583_s4 = sshll.u32 %s658_s30, 4  ;;  %s584_s4 = int_to_ptr.vmem [resolvable:$false] %s583_s4 }
  0x18   : > { %v573_v5 = vld [vmem:[%s193_s11 + $0x8] sm:$0xff]   ;;  %v574_v6 = vld [vmem:[%s193_s11] sm:$0xff]   ;;  %s183_s11 = sand.u32 1, %s639_s13   ;;  %s585_s5 = scalar_lea.vmem %s584_s4, 2048 }
  0x19   : > { %497 = vmatprep.subr.bf16.mxu0 %v573_v5  ;;  %509 = vmatprep.subr.bf16.mxu1 %v573_v5  ;;  %s471_s18 = sshll.u32 %s183_s11, 6  ;;  %s794_s15 = scalar_lea.sflag [#allocation3], %s183_s11 }
  0x1a   : > { %498 = vmatpush3.bf16.msra.mxu0 %v573_v5  ;;  %511 = vmatpush3.bf16.msra.mxu1 %v573_v5  ;;  %s185_s19 = scalar_lea.vmem [#allocation2], %s471_s18 }
  0x1b   : > { %499 = vmatprep.subr.bf16.mxu0 %v574_v6  ;;  %510 = vmatprep.subr.bf16.mxu1 %v574_v6  ;;  %s388_s23 = sshll.u32 %s185_s19, 4  ;;  %s790_s23 = int_to_ptr.vmem [resolvable:$true] %s388_s23 }
  0x1c   : > { %232 = vperm.xlu1 %572, %v210_v7   ;;  %222 = vperm.xlu0 %571, %v208_v8   ;;  %s579_s29 = scalar_lea.vmem %s790_s23, 1024  ;;  %p586_p1 = scmp.lt.s32.totalorder %s790_s23, %s584_s4 }
  0x1d   : > { %p580_p12 = scmp.ne.s32.totalorder %s790_s23, %s579_s29  ;;  %p587_p2 = scmp.lt.s32.totalorder %s585_s5, %s579_s29 }
  0x1e   : > { %500 = vmatpush3.bf16.msra.mxu0 %v574_v6  ;;  %512 = vmatpush3.bf16.msra.mxu1 %v574_v6 }
  0x1f   : > { %p581_p13 = pnand %p580_p12, %p721_p4  ;;  %p588_p3 = por %p587_p2, %p586_p1 }
  0x20   : > { %242 = vperm.xlu1 %572, %v212_v11   ;;  %237 = vperm.xlu0 %571, %v211_v12  }
  0x21   : > { %502 = vmatmul.mubr.msk.bf16.vlgmr.msra.gmra.mxu0 %vm287_vm0, %v577_v9  ;;  %506 = vmatmul.mubr.msk.bf16.vlgmr.msra.gmra.mxu1 %vm287_vm0, %v578_v10  ;;  %p582_p0 = pneg %p581_p13 }
  0x23   : > { %p589_p5 = pnand %p588_p3, %p582_p0 }
  0x24   : > { %252 = vperm.xlu1 %572, %v214_v13   ;;  %247 = vperm.xlu0 %571, %v213_v14  }
  0x92   : > { %v218_v15 = vpop.permute.xlu0 %217  ;;  %v228_v16 = vpop.permute.xlu1 %227 }
  0x97   : > { %v223_v17 = vpop.permute.xlu0 %222  ;;  %v233_v18 = vpop.permute.xlu1 %232 }
  0x9b   : > { %v238_v19 = vpop.permute.xlu0 %237  ;;  %v243_v20 = vpop.permute.xlu1 %242 }
  0x9f   : > { %v248_v21 = vpop.permute.xlu0 %247  ;;  %v253_v28 = vpop.permute.xlu1 %252 }
  0xe1   : > { %v503_v22 = vpop.f32.mrf.mxu0  ;;  %v507_v23 = vpop.f32.mrf.mxu1 }
  0xe2   : > { %v343_v24 = vadd.f32 %v503_v22, %v228_v16  ;;  %v359_v25 = vadd.f32 %v507_v23, %v248_v21 }
  0xe3   : > { %v334_v26 = vpop.f32.mrf.mxu0  ;;  %v350_v27 = vpop.f32.mrf.mxu1 }
  0xe4   : > { %367 = vst [vmem:[%s185_s19 + $0x10] sm:$0xff] %v343_v24  ;;  %371 = vst [vmem:[%s185_s19 + $0x30] sm:$0xff] %v359_v25  ;;  %v335_v29 = vadd.f32 %v334_v26, %v218_v15  ;;  %v351_v30 = vadd.f32 %v350_v27, %v238_v19 }
  0xe5   : > { %v504_v31 = vpop.f32.mrf.mxu0  ;;  %v508_v32 = vpop.f32.mrf.mxu1 }
  0xe6   : > { %365 = vst [vmem:[%s185_s19] sm:$0xff] %v335_v29  ;;  %369 = vst [vmem:[%s185_s19 + $0x20] sm:$0xff] %v351_v30  ;;  %v346_v33 = vadd.f32 %v504_v31, %v233_v18  ;;  %v362_v34 = vadd.f32 %v508_v32, %v253_v28 }
  0xe7   : > { %v337_v35 = vpop.f32.mrf.mxu0  ;;  %v353_v36 = vpop.f32.mrf.mxu1 }
  0xe8   : > { %368 = vst [vmem:[%s185_s19 + $0x18] sm:$0xff] %v346_v33  ;;  %372 = vst [vmem:[%s185_s19 + $0x38] sm:$0xff] %v362_v34  ;;  %v338_v37 = vadd.f32 %v337_v35, %v223_v17  ;;  %v354_v38 = vadd.f32 %v353_v36, %v243_v20 }
  0xea   : > { %366 = vst [vmem:[%s185_s19 + $0x8] sm:$0xff] %v338_v37  ;;  %370 = vst [vmem:[%s185_s19 + $0x28] sm:$0xff] %v354_v38 }
  0xeb   : > { %592 = shalt.err (!%p589_p5)
}
  0xec   : > { %s593_s6 = scalar_lea.hbm %s788_s28, 1024  ;;  %s597_s9 = scalar_lea.hbm %s842_s3, 2048 }
  0xed   : > { %p594_p6 = scmp.ne.s32.totalorder %s788_s28, %s593_s6  ;;  %p598_p10 = scmp.lt.s32.totalorder %s788_s28, %s842_s3 }
  0xee   : > { %p599_p11 = scmp.lt.s32.totalorder %s597_s9, %s593_s6 }
  0xef   : > { %p595_p7 = pnand %p594_p6, %p721_p4 }
  0xf0   : > { %p600_p12 = por %p599_p11, %p598_p10 }
  0xf1   : > { %p596_p9 = pneg %p595_p7 }
  0xf3   : > { %p601_p13 = pnand %p600_p12, %p596_p9 }
  0xf5   : > { %604 = shalt.err (!%p601_p13)
}
  0xf6   : > { %s659_s18 = smov 128   ;;  %s660_s19 = smov 8  }
  0xf7   : > { %513 = dma.vmem_to_hbm [thread:$0]  (%p721_p4), %s790_s23, 1024, %s788_s28, %s794_s15, %s659_s18, %s659_s18, %s660_s19  }
  0xf8 PF: > { %p519_p0 = scmp.ge.s32.totalorder %s655_s17, 2  ;;  %s403_s21 = sand.u32 1, %s635_s12  }
  0xf9   : > { %s404_s26 = scalar_lea.sflag [#allocation3], %s403_s21 }
  0xfa   : > { %p516_p1 = pnand %p519_p0, %p728_p8 }
  0xfc   : > { %p517_p2 = pneg %p516_p1 }
  0xfe   : > { %630 = dma.done.wait (%p517_p2), %s404_s26, 1024  }
  0xff   : > { %632 = vsyncadd (%p517_p2), %s404_s26, 4294966272  ;;  %s16_s17 = sadd.s32 1, %s655_s17   ;;  %s845_s12 = smov %s639_s13 }
 0x100   : > { %p13_p3 = scmp.ge.s32.totalorder %s16_s17, 4   ;;  %s846_s13 = smov %s643_s14 }
 0x101   : > { %s847_s14 = smov %s734_s25  ;;  %s848_s15 = smov %s651_s16 }
 0x102   : > { %s849_s16 = smov %s851_s20  ;;  %15 = sbr.rel (!%p13_p3) target bundleno = 4 (0x4), region = 67 }
 0x107   :  { %409 = vsyncpa [#allocation3], 1 }
 0x108   :  { %411 = vsyncpa [#allocation3 + $0x1], 1 }

</bundles_post_ra>
